<compile_context>
chip_gen: v5e
topology: v5e:2x2
jax: 0.10.0
libtpu: 0.0.40
codegen_flags: <defaults>
</compile_context>

<pallas_src>
import math
import functools

import jax
import jax.numpy as jnp
from jax import lax
from jax.experimental import pallas as pl
from jax.experimental.pallas import tpu as pltpu


def _round_up(x, m):
    return (x + m - 1) // m * m


# ---------------------------------------------------------------------------
# Fused kernel: the entire FCInjection forward for one row tile.
# ---------------------------------------------------------------------------
def _fcinjection_kernel(x_ref, p_ref, w0_ref, b0_ref, wl_ref, bl_ref,
                        wq_ref, wk_ref, wv_ref, wa_ref, wout_ref, bout_ref,
                        o_ref, *, layers, heads, head_dim, n_valid):
    f32 = jnp.float32
    bf16 = jnp.bfloat16

    tile_n = x_ref.shape[0]
    n_pad = p_ref.shape[0]

    x = x_ref[...]                                    # [tile_n, DIN_PAD] f32
    p_bf = p_ref[...].astype(bf16)                    # [n_pad, P_PAD]

    # ---- layer 0: h = tanh(x @ W0 + b0) -------------------------------------
    h = jnp.tanh(
        jnp.dot(x.astype(bf16), w0_ref[...], preferred_element_type=f32)
        + b0_ref[...])                                # [tile_n, H_PAD] f32

    # ---- K / V depend only on the payload (not the layer): compute once -----
    k_all = jnp.dot(p_bf, wk_ref[...], preferred_element_type=f32)   # [n_pad, heads*hd]
    v_all = jnp.dot(p_bf, wv_ref[...], preferred_element_type=f32)   # [n_pad, heads*hd]

    # Mask scores against zero-padded key rows (static no-op when n_pad == N).
    key_mask = None
    if n_pad > n_valid:
        key_mask = lax.broadcasted_iota(jnp.int32, (tile_n, n_pad), 1) < n_valid

    # ---- injection layers: h = W_l (h + inject(h, payload)) + b_l -----------
    # TODO(synk): for very large N (B*U) restructure the attention as a flash-style
    # online softmax over a kv grid axis instead of materializing [tile_n, n_pad] scores.
    for li in range(layers):
        # Fused per-head query projection; 1/scale is folded into wq_ref.
        q_all = jnp.dot(h.astype(bf16), wq_ref[...],
                        preferred_element_type=f32)   # [tile_n, heads*hd]
        inj = jnp.zeros_like(h)                       # [tile_n, H_PAD] f32
        for hh in range(heads):
            lo = hh * head_dim
            hi = lo + head_dim
            q = q_all[:, lo:hi].astype(bf16)          # [tile_n, hd]
            k = k_all[:, lo:hi].astype(bf16)          # [n_pad, hd]
            v = v_all[:, lo:hi].astype(bf16)          # [n_pad, hd]
            # scores = q @ k^T without materializing k.T (contract on last dims).
            s = lax.dot_general(q, k, (((1,), (1,)), ((), ())),
                                preferred_element_type=f32)          # [tile_n, n_pad]
            if key_mask is not None:
                s = jnp.where(key_mask, s, -1e30)
            m = jnp.max(s, axis=-1, keepdims=True)
            e = jnp.exp(s - m)
            sm = e * pl.reciprocal(jnp.sum(e, axis=-1, keepdims=True), approx=True)
            att = jnp.dot(sm.astype(bf16), v, preferred_element_type=f32)  # [tile_n, hd]
            # Accumulate instead of concatenating: inj += att_h @ Wa[h]
            inj = inj + jnp.dot(att.astype(bf16), wa_ref[hh],
                                preferred_element_type=f32)                # [tile_n, H_PAD]
        h = (jnp.dot((h + inj).astype(bf16), wl_ref[li],
                     preferred_element_type=f32) + bl_ref[li])

    # ---- output layer: tanh(h @ Wout + bout) --------------------------------
    out = jnp.tanh(
        jnp.dot(h.astype(bf16), wout_ref[...], preferred_element_type=f32)
        + bout_ref[...])
    o_ref[...] = out.astype(o_ref.dtype)


# ---------------------------------------------------------------------------
# Wrapper: pad / stack / bf16-cast params, build grid + BlockSpecs, call kernel.
# ---------------------------------------------------------------------------
def fcinjection_forward(params, x, payload, *, heads, scale, row_tile=256):
    B, U, din = x.shape
    psize = payload.shape[-1]
    hidden = params["linear"][0][0].shape[1]
    out_size = params["out"][0].shape[1]
    layers = len(params["linear"]) - 1
    head_dim = psize // heads
    hd_all = heads * head_dim

    n = B * U
    tile_n = min(row_tile, _round_up(n, 8))
    n_pad = _round_up(n, tile_n)

    din_p = _round_up(din, 128)
    h_p = _round_up(hidden, 128)
    p_p = _round_up(psize, 128)
    out_p = _round_up(out_size, 128)

    # ---- pad + stack + bf16-cast parameters (constant-folds under jit) ------
    def pad2(a, r, c):
        return jnp.pad(a, ((0, r - a.shape[0]), (0, c - a.shape[1])))

    w0, b0 = params["linear"][0]
    w0p = pad2(w0, din_p, h_p).astype(jnp.bfloat16)
    b0p = jnp.pad(b0, (0, h_p - hidden)).reshape(1, h_p)

    wl = jnp.stack([pad2(params["linear"][i][0], h_p, h_p)
                    for i in range(1, layers + 1)]).astype(jnp.bfloat16)
    bl = jnp.stack([jnp.pad(params["linear"][i][1], (0, h_p - hidden)).reshape(1, h_p)
                    for i in range(1, layers + 1)])

    # Per-head [D, hd] weights stacked along lanes -> fused projections.
    wq_all = jnp.concatenate([params["wq"][hh] for hh in range(heads)], axis=1) / scale
    wk_all = jnp.concatenate([params["wk"][hh] for hh in range(heads)], axis=1)
    wv_all = jnp.concatenate([params["wv"][hh] for hh in range(heads)], axis=1)
    wq_all = jnp.pad(wq_all, ((0, h_p - hidden), (0, 0))).astype(jnp.bfloat16)
    wk_all = jnp.pad(wk_all, ((0, p_p - psize), (0, 0))).astype(jnp.bfloat16)
    wv_all = jnp.pad(wv_all, ((0, p_p - psize), (0, 0))).astype(jnp.bfloat16)
    # attention_weight [heads*hd, hidden] -> [heads, hd, H_PAD] (leading head axis).
    wa3 = jnp.pad(params["wa"].reshape(heads, head_dim, hidden),
                  ((0, 0), (0, 0), (0, h_p - hidden))).astype(jnp.bfloat16)

    wout, bout = params["out"]
    woutp = pad2(wout, h_p, out_p).astype(jnp.bfloat16)
    boutp = jnp.pad(bout, (0, out_p - out_size)).reshape(1, out_p)

    # ---- pad activations (rows to n_pad, lanes to 128 multiples) ------------
    x2 = jnp.pad(x.reshape(n, din), ((0, n_pad - n), (0, din_p - din)))
    p2 = jnp.pad(payload.reshape(n, psize), ((0, n_pad - n), (0, p_p - psize)))

    grid = (n_pad // tile_n,)
    kernel = functools.partial(_fcinjection_kernel, layers=layers, heads=heads,
                               head_dim=head_dim, n_valid=n)

    # Advisory cost estimate (rough).
    steps = n_pad // tile_n
    flops = 2.0 * n_pad * (din_p * h_p + h_p * out_p
                           + layers * (h_p * hd_all + 2 * n_pad * hd_all
                                       + hd_all * h_p + h_p * h_p)) \
        + 2.0 * steps * 2 * n_pad * p_p * hd_all
    transcendentals = n_pad * (h_p + out_p) + layers * heads * float(n_pad) * n_pad
    bytes_accessed = 4 * (x2.size + p2.size + n_pad * out_p) \
        + 2 * (w0p.size + wl.size + wq_all.size + wk_all.size + wv_all.size
               + wa3.size + woutp.size) \
        + 4 * (b0p.size + bl.size + boutp.size)

    out = pl.pallas_call(
        kernel,
        out_shape=jax.ShapeDtypeStruct((n_pad, out_p), jnp.float32),
        grid=grid,
        in_specs=[
            pl.BlockSpec((tile_n, din_p), lambda i: (i, 0)),          # x row tile
            pl.BlockSpec((n_pad, p_p), lambda i: (0, 0)),             # payload (resident)
            pl.BlockSpec((din_p, h_p), lambda i: (0, 0)),             # W0
            pl.BlockSpec((1, h_p), lambda i: (0, 0)),                 # b0
            pl.BlockSpec((layers, h_p, h_p), lambda i: (0, 0, 0)),    # W_l stack
            pl.BlockSpec((layers, 1, h_p), lambda i: (0, 0, 0)),      # b_l stack
            pl.BlockSpec((h_p, hd_all), lambda i: (0, 0)),            # Wq (1/scale folded)
            pl.BlockSpec((p_p, hd_all), lambda i: (0, 0)),            # Wk
            pl.BlockSpec((p_p, hd_all), lambda i: (0, 0)),            # Wv
            pl.BlockSpec((heads, head_dim, h_p), lambda i: (0, 0, 0)),# Wa per head
            pl.BlockSpec((h_p, out_p), lambda i: (0, 0)),             # Wout
            pl.BlockSpec((1, out_p), lambda i: (0, 0)),               # bout
        ],
        out_specs=pl.BlockSpec((tile_n, out_p), lambda i: (i, 0)),
        compiler_params=pltpu.CompilerParams(
            dimension_semantics=("parallel",),
            vmem_limit_bytes=48 * 1024 * 1024),   # fits v7x 64 MiB with headroom
        cost_estimate=pl.CostEstimate(flops=int(flops),
                                      transcendentals=int(transcendentals),
                                      bytes_accessed=int(bytes_accessed)),
    )(x2, p2, w0p, b0p, wl, bl, wq_all, wk_all, wv_all, wa3, woutp, boutp)

    return out[:n, :out_size].reshape(B, U, out_size)


# ---------------------------------------------------------------------------
# Parameter init (deterministic, synthetic) + pure-f32 JAX reference
# ---------------------------------------------------------------------------
def init_params(key, *, input_size, payload_size, hidden_size, output_size,
                layers, heads):
    assert payload_size % heads == 0
    hd = payload_size // heads
    keys = jax.random.split(key, 2 * (layers + 2) + 4)
    ki = iter(keys)
    params = {"linear": [], "wq": None, "wk": None, "wv": None, "wa": None,
              "out": None}
    for i in range(layers + 1):
        din = input_size if i == 0 else hidden_size
        w = 0.1 * jax.random.normal(next(ki), (din, hidden_size), jnp.float32)
        b = 0.05 * jax.random.normal(next(ki), (hidden_size,), jnp.float32)
        params["linear"].append((w, b))
    params["wq"] = 0.1 * jax.random.normal(next(ki), (heads, hidden_size, hd), jnp.float32)
    params["wk"] = 0.1 * jax.random.normal(next(ki), (heads, payload_size, hd), jnp.float32)
    params["wv"] = 0.1 * jax.random.normal(next(ki), (heads, payload_size, hd), jnp.float32)
    params["wa"] = 0.1 * jax.random.normal(next(ki), (heads * hd, hidden_size), jnp.float32)
    wout = 0.1 * jax.random.normal(next(ki), (hidden_size, output_size), jnp.float32)
    bout = 0.05 * jax.random.normal(next(ki), (output_size,), jnp.float32)
    params["out"] = (wout, bout)
    return params


def fcinjection_reference(params, x, payload, *, heads, scale):
    B, U, din = x.shape
    n = B * U
    x2 = x.reshape(n, din)
    p2 = payload.reshape(n, -1)
    w0, b0 = params["linear"][0]
    h = jnp.tanh(x2 @ w0 + b0)
    for i in range(1, len(params["linear"])):
        atts = []
        for hh in range(heads):
            q = h @ params["wq"][hh]
            k = p2 @ params["wk"][hh]
            v = p2 @ params["wv"][hh]
            a = jax.nn.softmax((q @ k.T) / scale, axis=-1) @ v
            atts.append(a)
        inj = jnp.concatenate(atts, axis=-1) @ params["wa"]
        w, b = params["linear"][i]
        h = (h + inj) @ w + b
    wout, bout = params["out"]
    return jnp.tanh(h @ wout + bout).reshape(B, U, -1)


if __name__ == "__main__":
    # Small config consistent with the module.
    B, U = 2, 4
    input_size = 16
    payload_size = 8
    hidden_size = 32
    output_size = 16
    layers = 2          # -> 3 linear_layers total (layer 0 + 2 injection layers)
    heads = 2
    scale = math.sqrt(float(payload_size // heads))

    key = jax.random.PRNGKey(0)
    kp, kx, kpl = jax.random.split(key, 3)
    params = init_params(kp, input_size=input_size, payload_size=payload_size,
                         hidden_size=hidden_size, output_size=output_size,
                         layers=layers, heads=heads)
    x = jax.random.normal(kx, (B, U, input_size), jnp.float32)
    payload = jax.random.normal(kpl, (B, U, payload_size), jnp.float32)

    out = fcinjection_forward(params, x, payload, heads=heads, scale=scale)
    out = jax.block_until_ready(out)

    ref = fcinjection_reference(params, x, payload, heads=heads, scale=scale)
    assert out.shape == (B, U, output_size)
    # Tolerance accounts for bf16 MXU operands + approx softmax reciprocal vs f32 ref.
    err = float(jnp.max(jnp.abs(out - ref)))
    assert err < 5e-2, f"mismatch vs reference: max abs err = {err}"

    print("KERNEL_OK")
</pallas_src>

<mosaic_0001>
module attributes {stable_mosaic.version = 11 : i64} {
  func.func @_fcinjection_kernel(%arg0: i32, %arg1: memref<8x128xf32, #tpu.memory_space<vmem>>, %arg2: memref<8x128xf32, #tpu.memory_space<vmem>>, %arg3: memref<128x128xbf16, #tpu.memory_space<vmem>>, %arg4: memref<1x128xf32, #tpu.memory_space<vmem>>, %arg5: memref<2x128x128xbf16, #tpu.memory_space<vmem>>, %arg6: memref<2x1x128xf32, #tpu.memory_space<vmem>>, %arg7: memref<128x8xbf16, #tpu.memory_space<vmem>>, %arg8: memref<128x8xbf16, #tpu.memory_space<vmem>>, %arg9: memref<128x8xbf16, #tpu.memory_space<vmem>>, %arg10: memref<2x4x128xbf16, #tpu.memory_space<vmem>>, %arg11: memref<128x128xbf16, #tpu.memory_space<vmem>>, %arg12: memref<1x128xf32, #tpu.memory_space<vmem>>, %arg13: memref<8x128xf32, #tpu.memory_space<vmem>>) attributes {dimension_semantics = [#tpu.dimension_semantics<parallel>], iteration_bounds = array<i64: 1>, scalar_prefetch = 0 : i64, scratch_operands = 0 : i64, tpu.core_type = #tpu.core_type<tc>, window_params = [{transform_indices = @transform_0, window_bounds = array<i64: 8, 128>}, {pipeline_mode = #tpu.pipeline_mode<synchronous>, transform_indices = @transform_1, window_bounds = array<i64: 8, 128>}, {pipeline_mode = #tpu.pipeline_mode<synchronous>, transform_indices = @transform_2, window_bounds = array<i64: 128, 128>}, {pipeline_mode = #tpu.pipeline_mode<synchronous>, transform_indices = @transform_3, window_bounds = array<i64: 1, 128>}, {pipeline_mode = #tpu.pipeline_mode<synchronous>, transform_indices = @transform_4, window_bounds = array<i64: 2, 128, 128>}, {pipeline_mode = #tpu.pipeline_mode<synchronous>, transform_indices = @transform_5, window_bounds = array<i64: 2, 1, 128>}, {pipeline_mode = #tpu.pipeline_mode<synchronous>, transform_indices = @transform_6, window_bounds = array<i64: 128, 8>}, {pipeline_mode = #tpu.pipeline_mode<synchronous>, transform_indices = @transform_7, window_bounds = array<i64: 128, 8>}, {pipeline_mode = #tpu.pipeline_mode<synchronous>, transform_indices = @transform_8, window_bounds = array<i64: 128, 8>}, {pipeline_mode = #tpu.pipeline_mode<synchronous>, transform_indices = @transform_9, window_bounds = array<i64: 2, 4, 128>}, {pipeline_mode = #tpu.pipeline_mode<synchronous>, transform_indices = @transform_10, window_bounds = array<i64: 128, 128>}, {pipeline_mode = #tpu.pipeline_mode<synchronous>, transform_indices = @transform_11, window_bounds = array<i64: 1, 128>}, {transform_indices = @transform_12, window_bounds = array<i64: 8, 128>}]} {
    %c0 = arith.constant 0 : index
    %c0_0 = arith.constant 0 : index
    %0 = vector.load %arg1[%c0, %c0_0] : memref<8x128xf32, #tpu.memory_space<vmem>>, vector<8x128xf32>
    %c0_1 = arith.constant 0 : index
    %c0_2 = arith.constant 0 : index
    %1 = vector.load %arg2[%c0_1, %c0_2] : memref<8x128xf32, #tpu.memory_space<vmem>>, vector<8x128xf32>
    %2 = arith.truncf %1 : vector<8x128xf32> to vector<8x128xbf16>
    %3 = arith.truncf %0 : vector<8x128xf32> to vector<8x128xbf16>
    %c0_3 = arith.constant 0 : index
    %c0_4 = arith.constant 0 : index
    %4 = vector.load %arg3[%c0_3, %c0_4] : memref<128x128xbf16, #tpu.memory_space<vmem>>, vector<128x128xbf16>
    %cst = arith.constant dense<0.000000e+00> : vector<8x128xf32>
    %5 = tpu.matmul %3, %4, %cst {dimension_numbers = #tpu.dot_dimension_numbers<[1], [0], [0], [1], [0, 0, 1, 1], [], []>} : vector<8x128xbf16>, vector<128x128xbf16>, vector<8x128xf32> -> vector<8x128xf32>
    %c0_5 = arith.constant 0 : index
    %c0_6 = arith.constant 0 : index
    %6 = vector.load %arg4[%c0_5, %c0_6] : memref<1x128xf32, #tpu.memory_space<vmem>>, vector<1x128xf32>
    %7 = vector.broadcast %6 : vector<1x128xf32> to vector<8x128xf32>
    %8 = arith.addf %5, %7 : vector<8x128xf32>
    %9 = math.tanh %8 : vector<8x128xf32>
    %c0_7 = arith.constant 0 : index
    %c0_8 = arith.constant 0 : index
    %10 = vector.load %arg8[%c0_7, %c0_8] : memref<128x8xbf16, #tpu.memory_space<vmem>>, vector<128x8xbf16>
    %cst_9 = arith.constant dense<0.000000e+00> : vector<8x8xf32>
    %11 = tpu.matmul %2, %10, %cst_9 {dimension_numbers = #tpu.dot_dimension_numbers<[1], [0], [0], [1], [0, 0, 1, 1], [], []>} : vector<8x128xbf16>, vector<128x8xbf16>, vector<8x8xf32> -> vector<8x8xf32>
    %c0_10 = arith.constant 0 : index
    %c0_11 = arith.constant 0 : index
    %12 = vector.load %arg9[%c0_10, %c0_11] : memref<128x8xbf16, #tpu.memory_space<vmem>>, vector<128x8xbf16>
    %cst_12 = arith.constant dense<0.000000e+00> : vector<8x8xf32>
    %13 = tpu.matmul %2, %12, %cst_12 {dimension_numbers = #tpu.dot_dimension_numbers<[1], [0], [0], [1], [0, 0, 1, 1], [], []>} : vector<8x128xbf16>, vector<128x8xbf16>, vector<8x8xf32> -> vector<8x8xf32>
    %14 = arith.truncf %9 : vector<8x128xf32> to vector<8x128xbf16>
    %c0_13 = arith.constant 0 : index
    %c0_14 = arith.constant 0 : index
    %15 = vector.load %arg7[%c0_13, %c0_14] : memref<128x8xbf16, #tpu.memory_space<vmem>>, vector<128x8xbf16>
    %cst_15 = arith.constant dense<0.000000e+00> : vector<8x8xf32>
    %16 = tpu.matmul %14, %15, %cst_15 {dimension_numbers = #tpu.dot_dimension_numbers<[1], [0], [0], [1], [0, 0, 1, 1], [], []>} : vector<8x128xbf16>, vector<128x8xbf16>, vector<8x8xf32> -> vector<8x8xf32>
    %cst_16 = arith.constant 0.000000e+00 : f32
    %17 = vector.broadcast %cst_16 : f32 to vector<8x128xf32>
    %18 = vector.extract_strided_slice %16 {offsets = [0, 0], sizes = [8, 4], strides = [1, 1]} : vector<8x8xf32> to vector<8x4xf32>
    %19 = arith.truncf %18 : vector<8x4xf32> to vector<8x4xbf16>
    %20 = vector.extract_strided_slice %11 {offsets = [0, 0], sizes = [8, 4], strides = [1, 1]} : vector<8x8xf32> to vector<8x4xf32>
    %21 = arith.truncf %20 : vector<8x4xf32> to vector<8x4xbf16>
    %22 = vector.extract_strided_slice %13 {offsets = [0, 0], sizes = [8, 4], strides = [1, 1]} : vector<8x8xf32> to vector<8x4xf32>
    %23 = arith.truncf %22 : vector<8x4xf32> to vector<8x4xbf16>
    %cst_17 = arith.constant dense<0.000000e+00> : vector<8x8xf32>
    %24 = tpu.matmul %19, %21, %cst_17 {dimension_numbers = #tpu.dot_dimension_numbers<[1], [1], [0], [0], [0, 0, 1, 0], [], []>} : vector<8x4xbf16>, vector<8x4xbf16>, vector<8x8xf32> -> vector<8x8xf32>
    %cst_18 = arith.constant dense<0xFF800000> : vector<8xf32>
    %25 = vector.multi_reduction <maximumf>, %24, %cst_18 [1] : vector<8x8xf32> to vector<8xf32>
    %26 = vector.shape_cast %25 : vector<8xf32> to vector<8x1xf32>
    %27 = vector.broadcast %26 : vector<8x1xf32> to vector<8x8xf32>
    %28 = arith.subf %24, %27 : vector<8x8xf32>
    %29 = math.exp %28 : vector<8x8xf32>
    %cst_19 = arith.constant dense<0.000000e+00> : vector<8xf32>
    %30 = vector.multi_reduction <add>, %29, %cst_19 [1] : vector<8x8xf32> to vector<8xf32>
    %31 = vector.shape_cast %30 : vector<8xf32> to vector<8x1xf32>
    %32 = tpu.reciprocal %31 {approx = true} : vector<8x1xf32> -> vector<8x1xf32>
    %33 = vector.broadcast %32 : vector<8x1xf32> to vector<8x8xf32>
    %34 = arith.mulf %29, %33 : vector<8x8xf32>
    %35 = arith.truncf %34 : vector<8x8xf32> to vector<8x8xbf16>
    %cst_20 = arith.constant dense<0.000000e+00> : vector<8x4xf32>
    %36 = tpu.matmul %35, %23, %cst_20 {dimension_numbers = #tpu.dot_dimension_numbers<[1], [0], [0], [1], [0, 0, 1, 1], [], []>} : vector<8x8xbf16>, vector<8x4xbf16>, vector<8x4xf32> -> vector<8x4xf32>
    %37 = arith.truncf %36 : vector<8x4xf32> to vector<8x4xbf16>
    %c0_21 = arith.constant 0 : index
    %c0_22 = arith.constant 0 : index
    %c0_23 = arith.constant 0 : index
    %38 = vector.load %arg10[%c0_21, %c0_22, %c0_23] : memref<2x4x128xbf16, #tpu.memory_space<vmem>>, vector<1x4x128xbf16>
    %39 = vector.shape_cast %38 : vector<1x4x128xbf16> to vector<4x128xbf16>
    %cst_24 = arith.constant dense<0.000000e+00> : vector<8x128xf32>
    %40 = tpu.matmul %37, %39, %cst_24 {dimension_numbers = #tpu.dot_dimension_numbers<[1], [0], [0], [1], [0, 0, 1, 1], [], []>} : vector<8x4xbf16>, vector<4x128xbf16>, vector<8x128xf32> -> vector<8x128xf32>
    %41 = arith.addf %17, %40 : vector<8x128xf32>
    %42 = vector.extract_strided_slice %16 {offsets = [0, 4], sizes = [8, 4], strides = [1, 1]} : vector<8x8xf32> to vector<8x4xf32>
    %43 = arith.truncf %42 : vector<8x4xf32> to vector<8x4xbf16>
    %44 = vector.extract_strided_slice %11 {offsets = [0, 4], sizes = [8, 4], strides = [1, 1]} : vector<8x8xf32> to vector<8x4xf32>
    %45 = arith.truncf %44 : vector<8x4xf32> to vector<8x4xbf16>
    %46 = vector.extract_strided_slice %13 {offsets = [0, 4], sizes = [8, 4], strides = [1, 1]} : vector<8x8xf32> to vector<8x4xf32>
    %47 = arith.truncf %46 : vector<8x4xf32> to vector<8x4xbf16>
    %cst_25 = arith.constant dense<0.000000e+00> : vector<8x8xf32>
    %48 = tpu.matmul %43, %45, %cst_25 {dimension_numbers = #tpu.dot_dimension_numbers<[1], [1], [0], [0], [0, 0, 1, 0], [], []>} : vector<8x4xbf16>, vector<8x4xbf16>, vector<8x8xf32> -> vector<8x8xf32>
    %cst_26 = arith.constant dense<0xFF800000> : vector<8xf32>
    %49 = vector.multi_reduction <maximumf>, %48, %cst_26 [1] : vector<8x8xf32> to vector<8xf32>
    %50 = vector.shape_cast %49 : vector<8xf32> to vector<8x1xf32>
    %51 = vector.broadcast %50 : vector<8x1xf32> to vector<8x8xf32>
    %52 = arith.subf %48, %51 : vector<8x8xf32>
    %53 = math.exp %52 : vector<8x8xf32>
    %cst_27 = arith.constant dense<0.000000e+00> : vector<8xf32>
    %54 = vector.multi_reduction <add>, %53, %cst_27 [1] : vector<8x8xf32> to vector<8xf32>
    %55 = vector.shape_cast %54 : vector<8xf32> to vector<8x1xf32>
    %56 = tpu.reciprocal %55 {approx = true} : vector<8x1xf32> -> vector<8x1xf32>
    %57 = vector.broadcast %56 : vector<8x1xf32> to vector<8x8xf32>
    %58 = arith.mulf %53, %57 : vector<8x8xf32>
    %59 = arith.truncf %58 : vector<8x8xf32> to vector<8x8xbf16>
    %cst_28 = arith.constant dense<0.000000e+00> : vector<8x4xf32>
    %60 = tpu.matmul %59, %47, %cst_28 {dimension_numbers = #tpu.dot_dimension_numbers<[1], [0], [0], [1], [0, 0, 1, 1], [], []>} : vector<8x8xbf16>, vector<8x4xbf16>, vector<8x4xf32> -> vector<8x4xf32>
    %61 = arith.truncf %60 : vector<8x4xf32> to vector<8x4xbf16>
    %c1 = arith.constant 1 : index
    %c0_29 = arith.constant 0 : index
    %c0_30 = arith.constant 0 : index
    %62 = vector.load %arg10[%c1, %c0_29, %c0_30] : memref<2x4x128xbf16, #tpu.memory_space<vmem>>, vector<1x4x128xbf16>
    %63 = vector.shape_cast %62 : vector<1x4x128xbf16> to vector<4x128xbf16>
    %cst_31 = arith.constant dense<0.000000e+00> : vector<8x128xf32>
    %64 = tpu.matmul %61, %63, %cst_31 {dimension_numbers = #tpu.dot_dimension_numbers<[1], [0], [0], [1], [0, 0, 1, 1], [], []>} : vector<8x4xbf16>, vector<4x128xbf16>, vector<8x128xf32> -> vector<8x128xf32>
    %65 = arith.addf %41, %64 : vector<8x128xf32>
    %66 = arith.addf %9, %65 : vector<8x128xf32>
    %67 = arith.truncf %66 : vector<8x128xf32> to vector<8x128xbf16>
    %c0_32 = arith.constant 0 : index
    %c0_33 = arith.constant 0 : index
    %c0_34 = arith.constant 0 : index
    %68 = vector.load %arg5[%c0_32, %c0_33, %c0_34] : memref<2x128x128xbf16, #tpu.memory_space<vmem>>, vector<1x128x128xbf16>
    %69 = vector.shape_cast %68 : vector<1x128x128xbf16> to vector<128x128xbf16>
    %cst_35 = arith.constant dense<0.000000e+00> : vector<8x128xf32>
    %70 = tpu.matmul %67, %69, %cst_35 {dimension_numbers = #tpu.dot_dimension_numbers<[1], [0], [0], [1], [0, 0, 1, 1], [], []>} : vector<8x128xbf16>, vector<128x128xbf16>, vector<8x128xf32> -> vector<8x128xf32>
    %c0_36 = arith.constant 0 : index
    %c0_37 = arith.constant 0 : index
    %c0_38 = arith.constant 0 : index
    %71 = vector.load %arg6[%c0_36, %c0_37, %c0_38] : memref<2x1x128xf32, #tpu.memory_space<vmem>>, vector<1x1x128xf32>
    %72 = vector.shape_cast %71 : vector<1x1x128xf32> to vector<1x128xf32>
    %73 = vector.broadcast %72 : vector<1x128xf32> to vector<8x128xf32>
    %74 = arith.addf %70, %73 : vector<8x128xf32>
    %75 = arith.truncf %74 : vector<8x128xf32> to vector<8x128xbf16>
    %c0_39 = arith.constant 0 : index
    %c0_40 = arith.constant 0 : index
    %76 = vector.load %arg7[%c0_39, %c0_40] : memref<128x8xbf16, #tpu.memory_space<vmem>>, vector<128x8xbf16>
    %cst_41 = arith.constant dense<0.000000e+00> : vector<8x8xf32>
    %77 = tpu.matmul %75, %76, %cst_41 {dimension_numbers = #tpu.dot_dimension_numbers<[1], [0], [0], [1], [0, 0, 1, 1], [], []>} : vector<8x128xbf16>, vector<128x8xbf16>, vector<8x8xf32> -> vector<8x8xf32>
    %cst_42 = arith.constant 0.000000e+00 : f32
    %78 = vector.broadcast %cst_42 : f32 to vector<8x128xf32>
    %79 = vector.extract_strided_slice %77 {offsets = [0, 0], sizes = [8, 4], strides = [1, 1]} : vector<8x8xf32> to vector<8x4xf32>
    %80 = arith.truncf %79 : vector<8x4xf32> to vector<8x4xbf16>
    %81 = vector.extract_strided_slice %11 {offsets = [0, 0], sizes = [8, 4], strides = [1, 1]} : vector<8x8xf32> to vector<8x4xf32>
    %82 = arith.truncf %81 : vector<8x4xf32> to vector<8x4xbf16>
    %83 = vector.extract_strided_slice %13 {offsets = [0, 0], sizes = [8, 4], strides = [1, 1]} : vector<8x8xf32> to vector<8x4xf32>
    %84 = arith.truncf %83 : vector<8x4xf32> to vector<8x4xbf16>
    %cst_43 = arith.constant dense<0.000000e+00> : vector<8x8xf32>
    %85 = tpu.matmul %80, %82, %cst_43 {dimension_numbers = #tpu.dot_dimension_numbers<[1], [1], [0], [0], [0, 0, 1, 0], [], []>} : vector<8x4xbf16>, vector<8x4xbf16>, vector<8x8xf32> -> vector<8x8xf32>
    %cst_44 = arith.constant dense<0xFF800000> : vector<8xf32>
    %86 = vector.multi_reduction <maximumf>, %85, %cst_44 [1] : vector<8x8xf32> to vector<8xf32>
    %87 = vector.shape_cast %86 : vector<8xf32> to vector<8x1xf32>
    %88 = vector.broadcast %87 : vector<8x1xf32> to vector<8x8xf32>
    %89 = arith.subf %85, %88 : vector<8x8xf32>
    %90 = math.exp %89 : vector<8x8xf32>
    %cst_45 = arith.constant dense<0.000000e+00> : vector<8xf32>
    %91 = vector.multi_reduction <add>, %90, %cst_45 [1] : vector<8x8xf32> to vector<8xf32>
    %92 = vector.shape_cast %91 : vector<8xf32> to vector<8x1xf32>
    %93 = tpu.reciprocal %92 {approx = true} : vector<8x1xf32> -> vector<8x1xf32>
    %94 = vector.broadcast %93 : vector<8x1xf32> to vector<8x8xf32>
    %95 = arith.mulf %90, %94 : vector<8x8xf32>
    %96 = arith.truncf %95 : vector<8x8xf32> to vector<8x8xbf16>
    %cst_46 = arith.constant dense<0.000000e+00> : vector<8x4xf32>
    %97 = tpu.matmul %96, %84, %cst_46 {dimension_numbers = #tpu.dot_dimension_numbers<[1], [0], [0], [1], [0, 0, 1, 1], [], []>} : vector<8x8xbf16>, vector<8x4xbf16>, vector<8x4xf32> -> vector<8x4xf32>
    %98 = arith.truncf %97 : vector<8x4xf32> to vector<8x4xbf16>
    %c0_47 = arith.constant 0 : index
    %c0_48 = arith.constant 0 : index
    %c0_49 = arith.constant 0 : index
    %99 = vector.load %arg10[%c0_47, %c0_48, %c0_49] : memref<2x4x128xbf16, #tpu.memory_space<vmem>>, vector<1x4x128xbf16>
    %100 = vector.shape_cast %99 : vector<1x4x128xbf16> to vector<4x128xbf16>
    %cst_50 = arith.constant dense<0.000000e+00> : vector<8x128xf32>
    %101 = tpu.matmul %98, %100, %cst_50 {dimension_numbers = #tpu.dot_dimension_numbers<[1], [0], [0], [1], [0, 0, 1, 1], [], []>} : vector<8x4xbf16>, vector<4x128xbf16>, vector<8x128xf32> -> vector<8x128xf32>
    %102 = arith.addf %78, %101 : vector<8x128xf32>
    %103 = vector.extract_strided_slice %77 {offsets = [0, 4], sizes = [8, 4], strides = [1, 1]} : vector<8x8xf32> to vector<8x4xf32>
    %104 = arith.truncf %103 : vector<8x4xf32> to vector<8x4xbf16>
    %105 = vector.extract_strided_slice %11 {offsets = [0, 4], sizes = [8, 4], strides = [1, 1]} : vector<8x8xf32> to vector<8x4xf32>
    %106 = arith.truncf %105 : vector<8x4xf32> to vector<8x4xbf16>
    %107 = vector.extract_strided_slice %13 {offsets = [0, 4], sizes = [8, 4], strides = [1, 1]} : vector<8x8xf32> to vector<8x4xf32>
    %108 = arith.truncf %107 : vector<8x4xf32> to vector<8x4xbf16>
    %cst_51 = arith.constant dense<0.000000e+00> : vector<8x8xf32>
    %109 = tpu.matmul %104, %106, %cst_51 {dimension_numbers = #tpu.dot_dimension_numbers<[1], [1], [0], [0], [0, 0, 1, 0], [], []>} : vector<8x4xbf16>, vector<8x4xbf16>, vector<8x8xf32> -> vector<8x8xf32>
    %cst_52 = arith.constant dense<0xFF800000> : vector<8xf32>
    %110 = vector.multi_reduction <maximumf>, %109, %cst_52 [1] : vector<8x8xf32> to vector<8xf32>
    %111 = vector.shape_cast %110 : vector<8xf32> to vector<8x1xf32>
    %112 = vector.broadcast %111 : vector<8x1xf32> to vector<8x8xf32>
    %113 = arith.subf %109, %112 : vector<8x8xf32>
    %114 = math.exp %113 : vector<8x8xf32>
    %cst_53 = arith.constant dense<0.000000e+00> : vector<8xf32>
    %115 = vector.multi_reduction <add>, %114, %cst_53 [1] : vector<8x8xf32> to vector<8xf32>
    %116 = vector.shape_cast %115 : vector<8xf32> to vector<8x1xf32>
    %117 = tpu.reciprocal %116 {approx = true} : vector<8x1xf32> -> vector<8x1xf32>
    %118 = vector.broadcast %117 : vector<8x1xf32> to vector<8x8xf32>
    %119 = arith.mulf %114, %118 : vector<8x8xf32>
    %120 = arith.truncf %119 : vector<8x8xf32> to vector<8x8xbf16>
    %cst_54 = arith.constant dense<0.000000e+00> : vector<8x4xf32>
    %121 = tpu.matmul %120, %108, %cst_54 {dimension_numbers = #tpu.dot_dimension_numbers<[1], [0], [0], [1], [0, 0, 1, 1], [], []>} : vector<8x8xbf16>, vector<8x4xbf16>, vector<8x4xf32> -> vector<8x4xf32>
    %122 = arith.truncf %121 : vector<8x4xf32> to vector<8x4xbf16>
    %c1_55 = arith.constant 1 : index
    %c0_56 = arith.constant 0 : index
    %c0_57 = arith.constant 0 : index
    %123 = vector.load %arg10[%c1_55, %c0_56, %c0_57] : memref<2x4x128xbf16, #tpu.memory_space<vmem>>, vector<1x4x128xbf16>
    %124 = vector.shape_cast %123 : vector<1x4x128xbf16> to vector<4x128xbf16>
    %cst_58 = arith.constant dense<0.000000e+00> : vector<8x128xf32>
    %125 = tpu.matmul %122, %124, %cst_58 {dimension_numbers = #tpu.dot_dimension_numbers<[1], [0], [0], [1], [0, 0, 1, 1], [], []>} : vector<8x4xbf16>, vector<4x128xbf16>, vector<8x128xf32> -> vector<8x128xf32>
    %126 = arith.addf %102, %125 : vector<8x128xf32>
    %127 = arith.addf %74, %126 : vector<8x128xf32>
    %128 = arith.truncf %127 : vector<8x128xf32> to vector<8x128xbf16>
    %c1_59 = arith.constant 1 : index
    %c0_60 = arith.constant 0 : index
    %c0_61 = arith.constant 0 : index
    %129 = vector.load %arg5[%c1_59, %c0_60, %c0_61] : memref<2x128x128xbf16, #tpu.memory_space<vmem>>, vector<1x128x128xbf16>
    %130 = vector.shape_cast %129 : vector<1x128x128xbf16> to vector<128x128xbf16>
    %cst_62 = arith.constant dense<0.000000e+00> : vector<8x128xf32>
    %131 = tpu.matmul %128, %130, %cst_62 {dimension_numbers = #tpu.dot_dimension_numbers<[1], [0], [0], [1], [0, 0, 1, 1], [], []>} : vector<8x128xbf16>, vector<128x128xbf16>, vector<8x128xf32> -> vector<8x128xf32>
    %c1_63 = arith.constant 1 : index
    %c0_64 = arith.constant 0 : index
    %c0_65 = arith.constant 0 : index
    %132 = vector.load %arg6[%c1_63, %c0_64, %c0_65] : memref<2x1x128xf32, #tpu.memory_space<vmem>>, vector<1x1x128xf32>
    %133 = vector.shape_cast %132 : vector<1x1x128xf32> to vector<1x128xf32>
    %134 = vector.broadcast %133 : vector<1x128xf32> to vector<8x128xf32>
    %135 = arith.addf %131, %134 : vector<8x128xf32>
    %136 = arith.truncf %135 : vector<8x128xf32> to vector<8x128xbf16>
    %c0_66 = arith.constant 0 : index
    %c0_67 = arith.constant 0 : index
    %137 = vector.load %arg11[%c0_66, %c0_67] : memref<128x128xbf16, #tpu.memory_space<vmem>>, vector<128x128xbf16>
    %cst_68 = arith.constant dense<0.000000e+00> : vector<8x128xf32>
    %138 = tpu.matmul %136, %137, %cst_68 {dimension_numbers = #tpu.dot_dimension_numbers<[1], [0], [0], [1], [0, 0, 1, 1], [], []>} : vector<8x128xbf16>, vector<128x128xbf16>, vector<8x128xf32> -> vector<8x128xf32>
    %c0_69 = arith.constant 0 : index
    %c0_70 = arith.constant 0 : index
    %139 = vector.load %arg12[%c0_69, %c0_70] : memref<1x128xf32, #tpu.memory_space<vmem>>, vector<1x128xf32>
    %140 = vector.broadcast %139 : vector<1x128xf32> to vector<8x128xf32>
    %141 = arith.addf %138, %140 : vector<8x128xf32>
    %142 = math.tanh %141 : vector<8x128xf32>
    %c0_71 = arith.constant 0 : index
    %c0_72 = arith.constant 0 : index
    %143 = vector.load %arg13[%c0_71, %c0_72] : memref<8x128xf32, #tpu.memory_space<vmem>>, vector<8x128xf32>
    tpu.vector_store %arg13[%c0_71, %c0_72], %142 {strides = array<i32>} : memref<8x128xf32, #tpu.memory_space<vmem>>, vector<8x128xf32>,
    return
  }
  func.func @transform_0(%arg0: i32) -> (i32, i32) {
    %c0_i32 = arith.constant 0 : i32
    %c0_i32_0 = arith.constant 0 : i32
    return %arg0, %c0_i32 : i32, i32
  }
  func.func @transform_1(%arg0: i32) -> (i32, i32) {
    %c0_i32 = arith.constant 0 : i32
    %c0_i32_0 = arith.constant 0 : i32
    %c0_i32_1 = arith.constant 0 : i32
    return %c0_i32, %c0_i32_0 : i32, i32
  }
  func.func @transform_2(%arg0: i32) -> (i32, i32) {
    %c0_i32 = arith.constant 0 : i32
    %c0_i32_0 = arith.constant 0 : i32
    %c0_i32_1 = arith.constant 0 : i32
    return %c0_i32, %c0_i32_0 : i32, i32
  }
  func.func @transform_3(%arg0: i32) -> (i32, i32) {
    %c0_i32 = arith.constant 0 : i32
    %c0_i32_0 = arith.constant 0 : i32
    %c0_i32_1 = arith.constant 0 : i32
    return %c0_i32, %c0_i32_0 : i32, i32
  }
  func.func @transform_4(%arg0: i32) -> (i32, i32, i32) {
    %c0_i32 = arith.constant 0 : i32
    %c0_i32_0 = arith.constant 0 : i32
    %c0_i32_1 = arith.constant 0 : i32
    %c0_i32_2 = arith.constant 0 : i32
    return %c0_i32, %c0_i32_0, %c0_i32_1 : i32, i32, i32
  }
  func.func @transform_5(%arg0: i32) -> (i32, i32, i32) {
    %c0_i32 = arith.constant 0 : i32
    %c0_i32_0 = arith.constant 0 : i32
    %c0_i32_1 = arith.constant 0 : i32
    %c0_i32_2 = arith.constant 0 : i32
    return %c0_i32, %c0_i32_0, %c0_i32_1 : i32, i32, i32
  }
  func.func @transform_6(%arg0: i32) -> (i32, i32) {
    %c0_i32 = arith.constant 0 : i32
    %c0_i32_0 = arith.constant 0 : i32
    %c0_i32_1 = arith.constant 0 : i32
    return %c0_i32, %c0_i32_0 : i32, i32
  }
  func.func @transform_7(%arg0: i32) -> (i32, i32) {
    %c0_i32 = arith.constant 0 : i32
    %c0_i32_0 = arith.constant 0 : i32
    %c0_i32_1 = arith.constant 0 : i32
    return %c0_i32, %c0_i32_0 : i32, i32
  }
  func.func @transform_8(%arg0: i32) -> (i32, i32) {
    %c0_i32 = arith.constant 0 : i32
    %c0_i32_0 = arith.constant 0 : i32
    %c0_i32_1 = arith.constant 0 : i32
    return %c0_i32, %c0_i32_0 : i32, i32
  }
  func.func @transform_9(%arg0: i32) -> (i32, i32, i32) {
    %c0_i32 = arith.constant 0 : i32
    %c0_i32_0 = arith.constant 0 : i32
    %c0_i32_1 = arith.constant 0 : i32
    %c0_i32_2 = arith.constant 0 : i32
    return %c0_i32, %c0_i32_0, %c0_i32_1 : i32, i32, i32
  }
  func.func @transform_10(%arg0: i32) -> (i32, i32) {
    %c0_i32 = arith.constant 0 : i32
    %c0_i32_0 = arith.constant 0 : i32
    %c0_i32_1 = arith.constant 0 : i32
    return %c0_i32, %c0_i32_0 : i32, i32
  }
  func.func @transform_11(%arg0: i32) -> (i32, i32) {
    %c0_i32 = arith.constant 0 : i32
    %c0_i32_0 = arith.constant 0 : i32
    %c0_i32_1 = arith.constant 0 : i32
    return %c0_i32, %c0_i32_0 : i32, i32
  }
  func.func @transform_12(%arg0: i32) -> (i32, i32) {
    %c0_i32 = arith.constant 0 : i32
    %c0_i32_0 = arith.constant 0 : i32
    return %arg0, %c0_i32 : i32, i32
  }
}

</mosaic_0001>

<bundles_post_ra>
// kernel: tpu_custom_call.1
= control target key start
LH: loop header
LB: loop body
LE: loop exit
PB: predicated region body
PF: predicated region fallthrough
CT: control target
= control target key end

     0   :  { %17 = vsyncpa [#allocation3], 0  ;;  %s1824_s0 = inlined_call_operand.vmem [shape: f32[8,128], index: 0, kind: input, shape index: {}]   ;;  %s1825_s1 = inlined_call_operand.hbm [shape: f32[8,128], index: 1, kind: input, shape index: {}]   ;;  %s1826_s2 = inlined_call_operand.vmem [shape: bf16[128,128], index: 2, kind: input, shape index: {}]   ;;  %s1827_s3 = inlined_call_operand.hbm [shape: f32[1,128], index: 3, kind: input, shape index: {}]   ;;  %s1828_s4 = inlined_call_operand.vmem [shape: bf16[2,128,128], index: 4, kind: input, shape index: {}]   ;;  %s1829_s5 = inlined_call_operand.hbm [shape: f32[2,1,128], index: 5, kind: input, shape index: {}]   ;;  %s1830_s6 = inlined_call_operand.vmem [shape: bf16[128,8], index: 6, kind: input, shape index: {}]   ;;  %s1831_s7 = inlined_call_operand.vmem [shape: bf16[128,8], index: 7, kind: input, shape index: {}]   ;;  %s1832_s8 = inlined_call_operand.vmem [shape: bf16[128,8], index: 8, kind: input, shape index: {}]   ;;  %s1833_s9 = inlined_call_operand.vmem [shape: bf16[2,4,128], index: 9, kind: input, shape index: {}]   ;;  %s1834_s10 = inlined_call_operand.hbm [shape: bf16[128,128], index: 10, kind: input, shape index: {}]   ;;  %s1835_s11 = inlined_call_operand.hbm [shape: f32[1,128], index: 11, kind: input, shape index: {}]   ;;  %s1836_s12 = inlined_call_operand.hbm [shape: f32[8,128], index: 12, kind: output, shape index: {}]  }
   0x1   :  { %18 = vsyncpa [#allocation6], 0 }
   0x2   :  { %19 = vsyncpa [#allocation9], 0  ;;  %s41_s23 = sshll.u32 %s1827_s3, 4  ;;  %s42_s23 = int_to_ptr.hbm [resolvable:$true] %s41_s23 }
   0x3   :  { %20 = vsyncpa [#allocation4], 0  ;;  %s1499_s24 = smov [#allocation5]   ;;  %s74_s28 = sshll.u32 %s1834_s10, 4  ;;  %s75_s28 = int_to_ptr.hbm [resolvable:$true] %s74_s28 }
   0x4   :  { %s43_s25 = sshll.u32 %s1499_s24, 4  ;;  %s1500_s29 = smov [#allocation8]   ;;  %s44_s25 = int_to_ptr.vmem [resolvable:$true] %s43_s25 }
   0x5   :  { %46 = dma.hbm_to_vmem [thread:$0]  %s42_s23, 16, %s44_s25, [#allocation6]  }
   0x6   :  { %s76_s30 = sshll.u32 %s1500_s29, 4  ;;  %s1501_s13 = smov 64   ;;  %s77_s30 = int_to_ptr.vmem [resolvable:$true] %s76_s30 }
   0x7   :  { %s1502_s14 = smov 4   ;;  %s28_s3 = sshll.u32 %s1825_s1, 4  ;;  %s29_s3 = int_to_ptr.hbm [resolvable:$true] %s28_s3 }
   0x8   :  { %82 = dma.hbm_to_vmem [thread:$0]  %s75_s28, 1024, %s77_s30, [#allocation9], %s1501_s13, %s1501_s13, %s1502_s14  }
   0x9   :  { %s1503_s17 = smov [#allocation2]   ;;  %s53_s10 = sshll.u32 %s1829_s5, 4  ;;  %s54_s10 = int_to_ptr.hbm [resolvable:$true] %s53_s10 }
   0xa   :  { %s30_s18 = sshll.u32 %s1503_s17, 4  ;;  %s1504_s21 = smov [#allocation7]   ;;  %s31_s18 = int_to_ptr.vmem [resolvable:$true] %s30_s18 }
   0xb   :  { %33 = dma.hbm_to_vmem [thread:$0]  %s29_s3, 128, %s31_s18, [#allocation3]  }
   0xc   :  { %s55_s22 = sshll.u32 %s1504_s21, 4  ;;  %s1505_s23 = smov 16   ;;  %s56_s22 = int_to_ptr.vmem [resolvable:$true] %s55_s22 }
   0xd   :  { %s1506_s24 = smov 1   ;;  %s88_s1 = sshll.u32 %s1835_s11, 4  ;;  %s89_s1 = int_to_ptr.hbm [resolvable:$true] %s88_s1 }
   0xe   :  { %61 = dma.hbm_to_vmem [thread:$0]  %s54_s10, 32, %s56_s22, [#allocation6], %s1505_s23, %s1505_s23, %s1506_s24  }
   0xf   :  { %s1507_s27 = smov [#allocation10]  }
  0x10   :  { %s90_s28 = sshll.u32 %s1507_s27, 4  ;;  %s91_s28 = int_to_ptr.vmem [resolvable:$true] %s90_s28 }
  0x11   :  { %93 = dma.hbm_to_vmem [thread:$0]  %s89_s1, 16, %s91_s28, [#allocation9]  }
  0x12   :  { %1491 = dma.done.wait [#allocation3], 128  }
  0x13   :  { %1492 = vsyncadd [#allocation3], 4294967168 }
  0x14   :  { %1493 = dma.done.wait [#allocation6], 48  }
  0x15   :  { %1494 = vsyncadd [#allocation6], 4294967248 }
  0x16   :  { %1495 = dma.done.wait [#allocation9], 1040  }
  0x17   :  { %1496 = vsyncadd [#allocation9], 4294966256  ;;  %v1263_v0 = vld [vmem:[%s1826_s2 + $0x38] sm:$0xff]  ;;  %v1262_v1 = vld [vmem:[%s1826_s2 + $0x30] sm:$0xff]  ;;  %vm556_vm0 = vcmask 1041408   ;;  %vm436_vm1 = vcmask 31744  }
  0x18   :  { %187 = vmatpush.bf16.msra.mxu0 %v1263_v0  ;;  %v1271_v2 = vld [vmem:[%s1831_s7 + $0x38] sm:$0xff]  ;;  %v1270_v4 = vld [vmem:[%s1831_s7 + $0x30] sm:$0xff]  ;;  %v1261_v5 = vld [vmem:[%s1826_s2 + $0x28] sm:$0xff]  ;;  %s1508_s25 = smov 124   ;;  %vm472_vm2 = vcmask 1043456   ;;  %vm456_vm3 = vcmask 64512  }
  0x19   :  { %v1602_v3 = vld [vmem:[%s1830_s6 + $0x38] sm:$0xff]  ;;  %265 = vmatpush.bf16.msra.mxu1 %v1271_v2  ;;  %v1614_v6 = vld [vmem:[%s1830_s6 + $0x30] sm:$0xff]  ;;  %v1269_v7 = vld [vmem:[%s1831_s7 + $0x28] sm:$0xff] }
  0x1a   :  { %420 = vmatpush.bf16.msra.mxu3 %v1602_v3  ;;  %v1260_v8 = vld [vmem:[%s1826_s2 + $0x20] sm:$0xff]  ;;  %v1626_v9 = vld [vmem:[%s1830_s6 + $0x28] sm:$0xff]  ;;  %v1259_v11 = vld [vmem:[%s1826_s2 + $0x18] sm:$0xff] }
  0x1b   :  { %v1268_v10 = vld [vmem:[%s1831_s7 + $0x20] sm:$0xff]  ;;  %v1267_v13 = vld [vmem:[%s1831_s7 + $0x18] sm:$0xff]  ;;  %v1258_v14 = vld [vmem:[%s1826_s2 + $0x10] sm:$0xff] }
  0x1c   :  { %188 = vmatpush.bf16.msra.mxu0 %v1262_v1  ;;  %v1638_v12 = vld [vmem:[%s1830_s6 + $0x20] sm:$0xff]  ;;  %v1650_v15 = vld [vmem:[%s1830_s6 + $0x18] sm:$0xff]  ;;  %v1266_v16 = vld [vmem:[%s1831_s7 + $0x10] sm:$0xff] }
  0x1d   :  { %266 = vmatpush.bf16.msra.mxu1 %v1270_v4  ;;  %v1257_v17 = vld [vmem:[%s1826_s2 + $0x8] sm:$0xff]  ;;  %v1256_v19 = vld [vmem:[%s1826_s2] sm:$0xff]  ;;  %v1674_v25 = vld [vmem:[%s1830_s6 + $0x10] sm:$0xff] }
  0x1e   :  { %421 = vmatpush.bf16.msra.mxu3 %v1614_v6  ;;  %v1265_v18 = vld [vmem:[%s1831_s7 + $0x8] sm:$0xff]  ;;  %v115_v20 = vld [vmem:[%s1824_s0] sm:$0xff]  ;;  %v1279_v28 = vld [vmem:[%s1832_s8 + $0x38] sm:$0xff] }
  0x1f   :  { %v118_v21 = vpack.c.bf16 %v115_v20, %v115_v20  ;;  %v1264_v22 = vld [vmem:[%s1831_s7] sm:$0xff]  ;;  %v1680_v26 = vld [vmem:[%s1830_s6 + $0x8] sm:$0xff]  ;;  %342 = vmatpush.bf16.msra.mxu2 %v1279_v28  ;;  %v1278_v29 = vld [vmem:[%s1832_s8 + $0x30] sm:$0xff]  ;;  %s991_s7 = sshll.u32 %s1836_s12, 4  ;;  %s992_s7 = int_to_ptr.hbm [resolvable:$true] %s991_s7 }
  0x20   :  { %189 = vmatpush.bf16.msra.mxu0 %v1261_v5  ;;  %v116_v23 = vld [vmem:[#allocation2] sm:$0xff]  ;;  %v1277_v32 = vld [vmem:[%s1832_s8 + $0x28] sm:$0xff]  ;;  %v1275_v34 = vld [vmem:[%s1832_s8 + $0x18] sm:$0xff] }
  0x21   :  { %267 = vmatpush.bf16.msra.mxu1 %v1269_v7  ;;  %v117_v24 = vpack.c.bf16 %v116_v23, %v116_v23  ;;  %v1686_v27 = vld [vmem:[%s1830_s6] sm:$0xff]  ;;  %v1323_v35 = vld [vmem:[#allocation5] ss:$0 sm:$0xff]  ;;  %v1274_v36 = vld [vmem:[%s1832_s8 + $0x10] sm:$0xff] }
  0x22   :  { %422 = vmatpush.bf16.msra.mxu3 %v1626_v9  ;;  %v1135_v30 = vld [vmem:[%s1833_s9 + $0x2] sm:$0x3]  ;;  %v1273_v39 = vld [vmem:[%s1832_s8 + $0x8] sm:$0xff]  ;;  %v490_v56 = vld [vmem:[%s1833_s9] sm:$0x3] }
  0x23   :  { %v1699_v31 = vsel %vm556_vm0, %v1135_v30, 0  ;;  %343 = vmatpush.bf16.msra.mxu2 %v1278_v29  ;;  %v1276_v33 = vld [vmem:[%s1832_s8 + $0x20] sm:$0xff]  ;;  %v577_v57 = vsel %vm556_vm0, %v490_v56, 0 }
  0x24   :  { %190 = vmatpush.bf16.msra.mxu0 %v1260_v8  ;;  %v1272_v42 = vld [vmem:[%s1832_s8] sm:$0xff] }
  0x25   :  { %268 = vmatpush.bf16.msra.mxu1 %v1268_v10 }
  0x26   :  { %423 = vmatpush.bf16.msra.mxu3 %v1638_v12 }
  0x27   :  { %344 = vmatpush.bf16.msra.mxu2 %v1277_v32  ;;  %v1291_v32 = vld [vmem:[%s1828_s4 + $0x18] sm:$0xff] }
  0x28   :  { %191 = vmatpush.bf16.msra.mxu0 %v1259_v11 }
  0x29   :  { %269 = vmatpush.bf16.msra.mxu1 %v1267_v13 }
  0x2a   :  { %424 = vmatpush.bf16.msra.mxu3 %v1650_v15 }
  0x2b   :  { %345 = vmatpush.bf16.msra.mxu2 %v1276_v33  ;;  %v1290_v33 = vld [vmem:[%s1828_s4 + $0x10] sm:$0xff] }
  0x2c   :  { %192 = vmatpush.bf16.msra.mxu0 %v1258_v14 }
  0x2d   :  { %270 = vmatpush.bf16.msra.mxu1 %v1266_v16 }
  0x2e   :  { %425 = vmatpush.bf16.msra.mxu3 %v1674_v25 }
  0x2f   :  { %346 = vmatpush.bf16.msra.mxu2 %v1275_v34 }
  0x30   :  { %193 = vmatpush.bf16.msra.mxu0 %v1257_v17 }
  0x31   :  { %271 = vmatpush.bf16.msra.mxu1 %v1265_v18 }
  0x32   :  { %426 = vmatpush.bf16.msra.mxu3 %v1680_v26 }
  0x33   :  { %347 = vmatpush.bf16.msra.mxu2 %v1274_v36 }
  0x34   :  { %194 = vmatpush.bf16.msra.mxu0 %v1256_v19 }
  0x35   :  { %272 = vmatpush.bf16.msra.mxu1 %v1264_v22 }
  0x36   :  { %427 = vmatpush.bf16.msra.mxu3 %v1686_v27 }
  0x37   :  { %195 = vmatmul.bf16.vlgmr.msra.gmra.mxu0 %v118_v21  ;;  %348 = vmatpush.bf16.msra.mxu2 %v1273_v39 }
  0x38   :  { %273 = vmatmul.bf16.vlgmr.msra.gmra.mxu1 %v117_v24  ;;  %567 = vmatpush.bf16.msrb.mxu0 %v1699_v31 }
  0x39   :  { %586 = vmatpush.bf16.msrb.mxu1 %v577_v57 }
  0x3b   :  { %349 = vmatpush.bf16.msra.mxu2 %v1272_v42 }
  0x3e   :  { %350 = vmatmul.bf16.vlgmr.msra.gmra.mxu2 %v117_v24 }
  0xb4   :  { %v196_v37 = vpop.f32.mrf.mxu0 }
  0xb5   :  { %v197_v38 = vadd.f32 %v1323_v35, %v196_v37  ;;  %v274_v40 = vpop.f32.mrf.mxu1  ;;  %v1289_v37 = vld [vmem:[%s1828_s4 + $0x8] sm:$0xff] }
  0xb6   :  { %v434_v41 = vpack.c.bf16 %v274_v40, %v274_v40 }
  0xb7   :  { %1327 = vtanh.f32 %v197_v38  ;;  %v1288_v38 = vld [vmem:[%s1828_s4] sm:$0xff] }
  0xb8   :  { %495 = vrot.lane.b32.xlu0 %v434_v41, %s1508_s25  ;;  %v441_v43 = vsel %vm436_vm1, %v434_v41, 0 }
  0xb9   :  { %700 = vmatpush.bf16.xpose.msra.mxu0 %v441_v43  ;;  %450 = vmatpush.bf16.xpose.msrb.mxu2 %v441_v43 }
  0xbc   :  { %v198_v44 = vpop.f32.mrf.mxu0 }
  0xbd   :  { %v1722_v45 = vpop.eup %1327  ;;  %v276_v47 = vpop.f32.mrf.mxu1  ;;  %v1324_v44 = vld [vmem:[#allocation7] ss:$0 sm:$0xff] }
  0xbe   :  { %v355_v46 = vpack.c.bf16 %v1722_v45, %v1722_v45 }
  0xc0   :  { %428 = vmatmul.bf16.vlgmr.msra.gmra.mxu3 %v355_v46 }
  0xc1   :  { %v351_v53 = vpop.f32.mrf.mxu2 }
  0xc2   :  { %v435_v54 = vpack.c.bf16 %v351_v53, %v351_v53 }
  0xc4   :  { %v474_v58 = vsel %vm472_vm2, %v435_v54, 0 }
  0xc5   :  { %483 = vmatpush.bf16.msrb.mxu3 %v474_v58  ;;  %728 = vmatpush.bf16.msra.mxu1 %v474_v58 }
  0xc9   :  { %v353_v55 = vpop.f32.mrf.mxu2 }
 0x12a   :  { %v496_v48 = vpop.permute.xlu0 %495 }
 0x12b   :  { %v1727_v49 = vsel %vm436_vm1, %v496_v48, 0 }
 0x12c   :  { %510 = vmatpush.bf16.xpose.msra.mxu2 %v1727_v49 }
 0x143   :  { %v429_v50 = vpop.f32.mrf.mxu3 }
 0x144   :  { %v433_v51 = vpack.c.bf16 %v429_v50, %v429_v50 }
 0x146   :  { %492 = vrot.lane.b32.xlu0 %v433_v51, %s1508_s25  ;;  %1131 = vmatmul.msk.bf16.vlgmr.msrb.gmra.mxu2 %vm436_vm1, %v433_v51 }
 0x14b   :  { %v431_v52 = vpop.f32.mrf.mxu3 }
 0x14e   :  { %529 = vrot.lane.b32.xlu0 %v435_v54, %s1508_s25 }
 0x1b8   :  { %v493_v59 = vpop.permute.xlu0 %492 }
 0x1b9   :  { %1133 = vmatmul.msk.bf16.vlgmr.msra.gmra.mxu2 %vm436_vm1, %v493_v59 }
 0x1c0   :  { %v530_v63 = vpop.permute.xlu0 %529 }
 0x1c1   :  { %v535_v0 = vsel %vm472_vm2, %v530_v63, 0 }
 0x1c2   :  { %544 = vmatpush.bf16.msra.mxu3 %v535_v0 }
 0x1c9   :  { %v452_v60 = vpop.f32.mrf.mxu2 }
 0x1ca   :  { %v457_v61 = vsel %vm456_vm3, %v452_v60, -inf }
 0x1cb   :  { %458 = vmax.xlane.f32.xlu1 %v457_v61 }
 0x1d1   :  { %v454_v62 = vpop.f32.mrf.mxu2 }
 0x23c   :  { %v512_v1 = vpop.f32.mrf.mxu2 }
 0x23d   :  { %v516_v2 = vsel %vm456_vm3, %v512_v1, -inf }
 0x23e   :  { %v459_v4 = vpop.xlane.xlu1 %458  ;;  %517 = vmax.xlane.f32.xlu1 %v516_v2 }
 0x23f   :  { %v460_v5 = vsub.f32 %v452_v60, %v459_v4 }
 0x241   :  { %v461_v7 = vmul.f32 1.442695, %v460_v5 }
 0x243   :  { %1329 = vpow2.f32 %v461_v7 }
 0x244   :  { %v514_v8 = vpop.f32.mrf.mxu2 }
 0x249   :  { %v1330_v10 = vpop.eup %1329 }
 0x24a   :  { %v463_v11 = vsel %vm456_vm3, %v1330_v10, 0.0 }
 0x24b   :  { %464 = vadd.xlane.f32.xlu2 %v463_v11 }
 0x2b1   :  { %v518_v13 = vpop.xlane.xlu1 %517 }
 0x2b2   :  { %v519_v14 = vsub.f32 %v512_v1, %v518_v13 }
 0x2b4   :  { %v520_v16 = vmul.f32 1.442695, %v519_v14 }
 0x2b6   :  { %1331 = vpow2.f32 %v520_v16 }
 0x2bc   :  { %v1332_v17 = vpop.eup %1331 }
 0x2bd   :  { %v522_v18 = vsel %vm456_vm3, %v1332_v17, 0.0 }
 0x2be   :  { %v465_v19 = vpop.xlane.xlu2 %464  ;;  %523 = vadd.xlane.f32.xlu2 %v522_v18 }
 0x2bf   :  { %1333 = vrcp.f32 %v465_v19 }
 0x2c5   :  { %v1334_v20 = vpop.eup %1333 }
 0x2c6   :  { %v467_v21 = vmul.f32 %v1334_v20, %v1330_v10  ;;  %v1303_v20 = vld [vmem:[%s1828_s4 + $0x78] sm:$0xff] }
 0x2c8   :  { %v468_v22 = vpack.c.bf16 %v467_v21, %v467_v21  ;;  %v1302_v21 = vld [vmem:[%s1828_s4 + $0x70] sm:$0xff] }
 0x2ca   :  { %1132 = vmatmul.msk.bf16.vlgmr.msrb.gmra.mxu3 %vm456_vm3, %v468_v22 }
 0x2cb   :  { %676 = vmatpush.bf16.msrb.mxu3 %v1602_v3 }
 0x2cf   :  { %677 = vmatpush.bf16.msrb.mxu3 %v1614_v6 }
 0x2d3   :  { %678 = vmatpush.bf16.msrb.mxu3 %v1626_v9 }
 0x2d7   :  { %679 = vmatpush.bf16.msrb.mxu3 %v1638_v12  ;;  %v1295_v12 = vld [vmem:[%s1828_s4 + $0x38] sm:$0xff] }
 0x2d8   :  { %662 = vmatpush.bf16.msrb.mxu2 %v1295_v12 }
 0x2db   :  { %680 = vmatpush.bf16.msrb.mxu3 %v1650_v15  ;;  %v1294_v15 = vld [vmem:[%s1828_s4 + $0x30] sm:$0xff] }
 0x2dc   :  { %663 = vmatpush.bf16.msrb.mxu2 %v1294_v15  ;;  %v1297_v15 = vld [vmem:[%s1828_s4 + $0x48] sm:$0xff] }
 0x2df   :  { %681 = vmatpush.bf16.msrb.mxu3 %v1674_v25  ;;  %v1293_v25 = vld [vmem:[%s1828_s4 + $0x28] sm:$0xff] }
 0x2e0   :  { %664 = vmatpush.bf16.msrb.mxu2 %v1293_v25  ;;  %v1296_v25 = vld [vmem:[%s1828_s4 + $0x40] sm:$0xff] }
 0x2e3   :  { %682 = vmatpush.bf16.msrb.mxu3 %v1680_v26  ;;  %v1292_v26 = vld [vmem:[%s1828_s4 + $0x20] sm:$0xff] }
 0x2e4   :  { %665 = vmatpush.bf16.msrb.mxu2 %v1292_v26  ;;  %v1311_v26 = vld [vmem:[#allocation8 + $0x38] sm:$0xff] }
 0x2e7   :  { %683 = vmatpush.bf16.msrb.mxu3 %v1686_v27 }
 0x2e8   :  { %666 = vmatpush.bf16.msrb.mxu2 %v1291_v32  ;;  %v1308_v32 = vld [vmem:[#allocation8 + $0x20] sm:$0xff] }
 0x2ec   :  { %667 = vmatpush.bf16.msrb.mxu2 %v1290_v33  ;;  %v1307_v33 = vld [vmem:[#allocation8 + $0x18] sm:$0xff] }
 0x2f0   :  { %668 = vmatpush.bf16.msrb.mxu2 %v1289_v37 }
 0x2f4   :  { %669 = vmatpush.bf16.msrb.mxu2 %v1288_v38 }
 0x2f8   :  { %793 = vmatpush.bf16.msra.mxu2 %v1699_v31 }
 0x331   :  { %v524_v23 = vpop.xlane.xlu2 %523 }
 0x332   :  { %1335 = vrcp.f32 %v524_v23 }
 0x338   :  { %v1336_v24 = vpop.eup %1335 }
 0x339   :  { %v526_v28 = vmul.f32 %v1336_v24, %v1332_v17  ;;  %v1301_v24 = vld [vmem:[%s1828_s4 + $0x68] sm:$0xff] }
 0x33b   :  { %v527_v29 = vpack.c.bf16 %v526_v28, %v526_v28  ;;  %v1300_v28 = vld [vmem:[%s1828_s4 + $0x60] sm:$0xff] }
 0x33d   :  { %1134 = vmatmul.msk.bf16.vlgmr.msra.gmra.mxu3 %vm456_vm3, %v527_v29 }
 0x33e   :  { %809 = vmatpush.bf16.msra.mxu3 %v577_v57 }
 0x34d   :  { %v485_v3 = vpop.f32.mrf.mxu3 }
 0x34e   :  { %v489_v6 = vpack.c.bf16 %v485_v3, %v485_v3  ;;  %v1299_v3 = vld [vmem:[%s1828_s4 + $0x58] sm:$0xff] }
 0x350   :  { %1137 = vmatmul.msk.bf16.vlgmr.msrb.gmra.mxu1 %vm436_vm1, %v489_v6  ;;  %v1298_v6 = vld [vmem:[%s1828_s4 + $0x50] sm:$0xff]  ;;  %s1509_s4 = smov [#allocation11]  }
 0x351   :  { %776 = vmatpush.bf16.msrb.mxu1 %v535_v0  ;;  %s989_s28 = sshll.u32 %s1509_s4, 4  ;;  %s990_s28 = int_to_ptr.vmem [resolvable:$true] %s989_s28 }
 0x355   :  { %v487_v9 = vpop.f32.mrf.mxu3 }
 0x3c0   :  { %v546_v27 = vpop.f32.mrf.mxu3 }
 0x3c1   :  { %v550_v30 = vpack.c.bf16 %v546_v27, %v546_v27  ;;  %v1310_v27 = vld [vmem:[#allocation8 + $0x30] sm:$0xff] }
 0x3c3   :  { %1136 = vmatmul.msk.bf16.vlgmr.msrb.gmra.mxu0 %vm436_vm1, %v550_v30  ;;  %v1309_v30 = vld [vmem:[#allocation8 + $0x28] sm:$0xff] }
 0x3c4   :  { %748 = vmatpush.bf16.xpose.msrb.mxu0 %v1727_v49 }
 0x3c8   :  { %v548_v34 = vpop.f32.mrf.mxu3 }
 0x3c9   :  { %v1306_v34 = vld [vmem:[#allocation8 + $0x10] sm:$0xff] }
 0x3cd   :  { %v588_v35 = vpop.f32.mrf.mxu1 }
 0x3d5   :  { %v590_v36 = vpop.f32.mrf.mxu1 }
 0x440   :  { %v569_v39 = vpop.f32.mrf.mxu0 }
 0x441   :  { %v589_v40 = vadd.f32 %v588_v35, %v569_v39  ;;  %v1305_v35 = vld [vmem:[#allocation8 + $0x8] sm:$0xff] }
 0x443   :  { %v592_v41 = vadd.f32 %v1722_v45, %v589_v40 }
 0x445   :  { %v593_v42 = vpack.c.bf16 %v592_v41, %v592_v41  ;;  %v1304_v41 = vld [vmem:[#allocation8] sm:$0xff] }
 0x447   :  { %670 = vmatmul.bf16.vlgmr.msrb.gmra.mxu2 %v593_v42  ;;  %v1325_v42 = vld [vmem:[#allocation7 + $0x1] ss:$0 sm:$0xff] }
 0x448   :  { %v571_v43 = vpop.f32.mrf.mxu0 }
 0x4ca   :  { %v671_v46 = vpop.f32.mrf.mxu2 }
 0x4cb   :  { %v1781_v47 = vadd.f32 %v1324_v44, %v671_v46 }
 0x4cd   :  { %v675_v48 = vpack.c.bf16 %v1781_v47, %v1781_v47 }
 0x4cf   :  { %684 = vmatmul.bf16.vlgmr.msrb.gmra.mxu3 %v675_v48 }
 0x4d2   :  { %v673_v49 = vpop.f32.mrf.mxu2 }
 0x4d3   :  { %v1326_v49 = vld [vmem:[#allocation10] ss:$0 sm:$0xff] }
 0x552   :  { %v685_v50 = vpop.f32.mrf.mxu3 }
 0x553   :  { %v689_v51 = vpack.c.bf16 %v685_v50, %v685_v50 }
 0x555   :  { %736 = vrot.lane.b32.xlu1 %v689_v51, %s1508_s25  ;;  %1170 = vmatmul.msk.bf16.vlgmr.msra.gmra.mxu0 %vm436_vm1, %v689_v51 }
 0x556   :  { %887 = vmatpush.bf16.msra.mxu0 %v1303_v20 }
 0x55a   :  { %v687_v31 = vpop.f32.mrf.mxu3  ;;  %888 = vmatpush.bf16.msra.mxu0 %v1302_v21 }
 0x55e   :  { %889 = vmatpush.bf16.msra.mxu0 %v1301_v24 }
 0x562   :  { %890 = vmatpush.bf16.msra.mxu0 %v1300_v28 }
 0x566   :  { %891 = vmatpush.bf16.msra.mxu0 %v1299_v3 }
 0x56a   :  { %892 = vmatpush.bf16.msra.mxu0 %v1298_v6 }
 0x56e   :  { %893 = vmatpush.bf16.msra.mxu0 %v1297_v15 }
 0x572   :  { %894 = vmatpush.bf16.msra.mxu0 %v1296_v25 }
 0x5c7   :  { %v737_v45 = vpop.permute.xlu1 %736 }
 0x5c8   :  { %1172 = vmatmul.msk.bf16.vlgmr.msrb.gmra.mxu0 %vm436_vm1, %v737_v45 }
 0x5d2   :  { %v702_v52 = vpop.f32.mrf.mxu0 }
 0x5d3   :  { %v706_v53 = vsel %vm456_vm3, %v702_v52, -inf }
 0x5d4   :  { %707 = vmax.xlane.f32.xlu2 %v706_v53 }
 0x5da   :  { %v704_v54 = vpop.f32.mrf.mxu0 }
 0x645   :  { %v750_v55 = vpop.f32.mrf.mxu0 }
 0x646   :  { %v754_v56 = vsel %vm456_vm3, %v750_v55, -inf }
 0x647   :  { %v708_v57 = vpop.xlane.xlu2 %707  ;;  %755 = vmax.xlane.f32.xlu0 %v754_v56 }
 0x648   :  { %v709_v58 = vsub.f32 %v702_v52, %v708_v57 }
 0x64a   :  { %v710_v59 = vmul.f32 1.442695, %v709_v58 }
 0x64c   :  { %1337 = vpow2.f32 %v710_v59 }
 0x64d   :  { %v752_v60 = vpop.f32.mrf.mxu0 }
 0x652   :  { %v1338_v61 = vpop.eup %1337 }
 0x653   :  { %v712_v62 = vsel %vm456_vm3, %v1338_v61, 0.0 }
 0x654   :  { %713 = vadd.xlane.f32.xlu2 %v712_v62 }
 0x6ba   :  { %v756_v63 = vpop.xlane.xlu0 %755 }
 0x6bb   :  { %v757_v0 = vsub.f32 %v750_v55, %v756_v63 }
 0x6bd   :  { %v758_v1 = vmul.f32 1.442695, %v757_v0 }
 0x6bf   :  { %1339 = vpow2.f32 %v758_v1 }
 0x6c5   :  { %v1340_v2 = vpop.eup %1339 }
 0x6c6   :  { %v760_v4 = vsel %vm456_vm3, %v1340_v2, 0.0 }
 0x6c7   :  { %v714_v5 = vpop.xlane.xlu2 %713  ;;  %761 = vadd.xlane.f32.xlu2 %v760_v4 }
 0x6c8   :  { %1341 = vrcp.f32 %v714_v5 }
 0x6ce   :  { %v1342_v7 = vpop.eup %1341 }
 0x6cf   :  { %v716_v8 = vmul.f32 %v1342_v7, %v1338_v61 }
 0x6d1   :  { %v717_v10 = vpack.c.bf16 %v716_v8, %v716_v8 }
 0x6d3   :  { %1171 = vmatmul.msk.bf16.vlgmr.msra.gmra.mxu1 %vm456_vm3, %v717_v10 }
 0x6d4   :  { %969 = vmatpush.bf16.msra.mxu1 %v1311_v26 }
 0x6d8   :  { %970 = vmatpush.bf16.msra.mxu1 %v1310_v27 }
 0x6dc   :  { %971 = vmatpush.bf16.msra.mxu1 %v1309_v30 }
 0x6e0   :  { %972 = vmatpush.bf16.msra.mxu1 %v1308_v32 }
 0x6e4   :  { %973 = vmatpush.bf16.msra.mxu1 %v1307_v33 }
 0x6e8   :  { %974 = vmatpush.bf16.msra.mxu1 %v1306_v34 }
 0x6ec   :  { %975 = vmatpush.bf16.msra.mxu1 %v1305_v35 }
 0x6f0   :  { %976 = vmatpush.bf16.msra.mxu1 %v1304_v41 }
 0x73a   :  { %v762_v11 = vpop.xlane.xlu2 %761 }
 0x73b   :  { %1343 = vrcp.f32 %v762_v11 }
 0x741   :  { %v1344_v13 = vpop.eup %1343 }
 0x742   :  { %v764_v14 = vmul.f32 %v1344_v13, %v1340_v2 }
 0x744   :  { %v765_v16 = vpack.c.bf16 %v764_v14, %v764_v14 }
 0x746   :  { %1173 = vmatmul.msk.bf16.vlgmr.msrb.gmra.mxu1 %vm456_vm3, %v765_v16 }
 0x750   :  { %v730_v17 = vpop.f32.mrf.mxu1 }
 0x751   :  { %v734_v18 = vpack.c.bf16 %v730_v17, %v730_v17 }
 0x753   :  { %1175 = vmatmul.msk.bf16.vlgmr.msra.gmra.mxu3 %vm436_vm1, %v734_v18 }
 0x758   :  { %v732_v19 = vpop.f32.mrf.mxu1 }
 0x7c3   :  { %v778_v22 = vpop.f32.mrf.mxu1 }
 0x7c4   :  { %v782_v23 = vpack.c.bf16 %v778_v22, %v778_v22 }
 0x7c6   :  { %1174 = vmatmul.msk.bf16.vlgmr.msra.gmra.mxu2 %vm436_vm1, %v782_v23 }
 0x7cb   :  { %v780_v29 = vpop.f32.mrf.mxu1 }
 0x7d6   :  { %v811_v9 = vpop.f32.mrf.mxu3 }
 0x7de   :  { %v813_v12 = vpop.f32.mrf.mxu3 }
 0x849   :  { %v795_v36 = vpop.f32.mrf.mxu2 }
 0x84a   :  { %v812_v37 = vadd.f32 %v811_v9, %v795_v36 }
 0x84c   :  { %v815_v38 = vadd.f32 %v812_v37, %v1781_v47 }
 0x84e   :  { %v816_v39 = vpack.c.bf16 %v815_v38, %v815_v38 }
 0x850   :  { %895 = vmatmul.bf16.vlgmr.msra.gmra.mxu0 %v816_v39 }
 0x851   :  { %v797_v40 = vpop.f32.mrf.mxu2 }
 0x8cd   :  { %v896_v43 = vpop.f32.mrf.mxu0 }
 0x8ce   :  { %v897_v44 = vadd.f32 %v1325_v42, %v896_v43 }
 0x8d0   :  { %v900_v46 = vpack.c.bf16 %v897_v44, %v897_v44 }
 0x8d2   :  { %977 = vmatmul.bf16.vlgmr.msra.gmra.mxu1 %v900_v46 }
 0x8d5   :  { %v898_v48 = vpop.f32.mrf.mxu0 }
 0x94f   :  { %v978_v50 = vpop.f32.mrf.mxu1 }
 0x950   :  { %v979_v51 = vadd.f32 %v1326_v49, %v978_v50 }
 0x952   :  { %1345 = vtanh.f32 %v979_v51 }
 0x957   :  { %v980_v47 = vpop.f32.mrf.mxu1 }
 0x958   :  { %v1346_v31 = vpop.eup %1345 }
 0x959   :  { %983 = vst [vmem:[#allocation11] sm:$0xff] %v1346_v31 }
 0x95a   :  { %994 = dma.vmem_to_hbm [thread:$0]  %s990_s28, 128, %s992_s7, [#allocation4]  }
 0x95b   :  { %1497 = dma.done.wait [#allocation4], 128  }
 0x95c   :  { %1498 = vsyncadd [#allocation4], 4294967168 }
 0x95d   :  { %999 = vsyncpa [#allocation3], 1 }
 0x95e   :  { %1000 = vsyncpa [#allocation6], 1 }
 0x95f   :  { %1001 = vsyncpa [#allocation9], 1 }
 0x960   :  { %1002 = vsyncpa [#allocation4], 1 }

</bundles_post_ra>
